<compile_context>
chip_gen: v6e
topology: v6e:2x2x1
jax: 0.10.0
libtpu: 0.0.40
codegen_flags: <defaults>
</compile_context>

<pallas_src>
import jax
import jax.numpy as jnp
from jax.experimental import pallas as pl
from jax.experimental.pallas import tpu as pltpu


def _round_up(n, m):
    return ((n + m - 1) // m) * m


def _mlp_kernel(x_ref, w1_ref, b1_ref, w2_ref, b2_ref, o_ref):
    # Fused: matmul -> bias -> ReLU -> matmul -> bias; f32 accumulation on the MXU.
    h = jnp.dot(x_ref[...], w1_ref[...], preferred_element_type=jnp.float32)
    h = jnp.maximum(h + b1_ref[...], 0.0)                      # bias + ReLU in f32
    y = jnp.dot(h.astype(w2_ref.dtype), w2_ref[...],
                preferred_element_type=jnp.float32) + b2_ref[...]
    o_ref[...] = y.astype(o_ref.dtype)


def prepare_params(w1, b1, w2, b2, *, use_bf16_inputs=True):
    """One-time parameter prep (hoisted out of the forward pass).

    Pads only the hidden dim to a multiple of 128 (lane-dense vregs for the
    intermediate); input and output feature dims are left at their true sizes.
    Optionally casts the weights to bf16 for the MXU; biases stay f32.
    Zero-padding is numerically free: padded hidden lanes are 0 after bias+ReLU
    and meet all-zero W2 rows.
    """
    in_dim, hidden = w1.shape
    out_dim = w2.shape[1]
    hid_p = _round_up(hidden, 128)
    f32 = jnp.float32
    w1p = jnp.zeros((in_dim, hid_p), f32).at[:, :hidden].set(w1.astype(f32))
    b1p = jnp.zeros((1, hid_p), f32).at[:, :hidden].set(
        jnp.reshape(b1, (1, hidden)).astype(f32))
    w2p = jnp.zeros((hid_p, out_dim), f32).at[:hidden, :].set(w2.astype(f32))
    b2p = jnp.reshape(b2, (1, out_dim)).astype(f32)
    if use_bf16_inputs:
        w1p = w1p.astype(jnp.bfloat16)
        w2p = w2p.astype(jnp.bfloat16)
    return w1p, b1p, w2p, b2p


def rarity_predictor_forward(x, w1p, b1p, w2p, b2p, *, batch_tile=1024):
    """Fused 2-layer MLP forward. x: [B, input_size] -> [B, output_size] (f32).

    Takes parameters produced by `prepare_params` (weights pre-transposed as
    [in, out] and hidden-padded once). x is cast to the weight compute dtype
    (bf16 or f32); no HBM-side padding of x or the output is performed.
    """
    B, in_dim = x.shape
    assert w1p.shape[0] == in_dim, "x / W1 inner-dim mismatch"
    hid_p = w1p.shape[1]
    out_dim = w2p.shape[1]

    compute_dtype = w1p.dtype
    x = x.astype(compute_dtype)

    # Row alignment: bf16 packs 16 rows per vreg sublane group, f32 packs 8.
    row_align = 16 if compute_dtype == jnp.bfloat16 else 8
    if B <= batch_tile:
        bt = max(_round_up(B, row_align), row_align)
    else:
        bt = batch_tile
    grid = (pl.cdiv(B, bt),)

    in_bytes = jnp.dtype(compute_dtype).itemsize
    cost = pl.CostEstimate(
        flops=2 * B * (in_dim * hid_p + hid_p * out_dim),
        transcendentals=0,
        bytes_accessed=(B * in_dim * in_bytes                       # x read
                        + (in_dim * hid_p + hid_p * out_dim) * in_bytes  # weights
                        + (hid_p + out_dim) * 4                     # biases (f32)
                        + B * out_dim * 4),                         # output write
    )

    out = pl.pallas_call(
        _mlp_kernel,
        out_shape=jax.ShapeDtypeStruct((B, out_dim), jnp.float32),
        grid_spec=pltpu.PrefetchScalarGridSpec(
            num_scalar_prefetch=0,
            grid=grid,
            in_specs=[
                # x: true width (last dim == full array dim -> allowed, no padding).
                pl.BlockSpec((bt, in_dim), lambda i: (i, 0)),
                # Weights/biases: constant block index -> resident, no re-DMA per step.
                pl.BlockSpec((in_dim, hid_p), lambda i: (0, 0)),
                pl.BlockSpec((1, hid_p), lambda i: (0, 0)),
                pl.BlockSpec((hid_p, out_dim), lambda i: (0, 0)),
                pl.BlockSpec((1, out_dim), lambda i: (0, 0)),
            ],
            # Output at its true width; last-tile OOB rows are masked on store.
            out_specs=pl.BlockSpec((bt, out_dim), lambda i: (i, 0)),
        ),
        compiler_params=pltpu.CompilerParams(
            # Batch axis is embarrassingly parallel -> shards across v7x's 2 TCs
            # whenever the grid has >= 2 tiles (B > batch_tile).
            dimension_semantics=("parallel",),
        ),
        cost_estimate=cost,
    )(x, w1p, b1p, w2p, b2p)
    return out


def init_params(key, input_size, hidden_size, output_size):
    """Deterministic PyTorch-Linear-style init (uniform(-1/sqrt(fan_in), ...)).

    Returns raw (unpadded) params stored as [in, out] (transpose of PyTorch's
    [out, in]); run them through `prepare_params` once before calling forward.
    """
    k1, k2, k3, k4 = jax.random.split(key, 4)
    lim1 = 1.0 / jnp.sqrt(jnp.float32(input_size))
    lim2 = 1.0 / jnp.sqrt(jnp.float32(hidden_size))
    w1 = jax.random.uniform(k1, (input_size, hidden_size), jnp.float32, -lim1, lim1)
    b1 = jax.random.uniform(k2, (hidden_size,), jnp.float32, -lim1, lim1)
    w2 = jax.random.uniform(k3, (hidden_size, output_size), jnp.float32, -lim2, lim2)
    b2 = jax.random.uniform(k4, (output_size,), jnp.float32, -lim2, lim2)
    return w1, b1, w2, b2


if __name__ == "__main__":
    input_size, hidden_size, output_size = 32, 64, 8
    batch = 16

    key = jax.random.PRNGKey(0)
    kx, kp = jax.random.split(key)
    x = jax.random.normal(kx, (batch, input_size), jnp.float32)
    w1, b1, w2, b2 = init_params(kp, input_size, hidden_size, output_size)

    # Pure-JAX reference (same math the kernel fuses).
    ref = jnp.maximum(x @ w1 + b1[None, :], 0.0) @ w2 + b2[None, :]

    # Default path: bf16 MXU inputs, f32 accumulation / bias / output.
    params_bf16 = prepare_params(w1, b1, w2, b2, use_bf16_inputs=True)
    out_bf16 = jax.block_until_ready(
        rarity_predictor_forward(x, *params_bf16))
    assert out_bf16.shape == (batch, output_size)
    assert out_bf16.dtype == jnp.float32
    assert jnp.allclose(out_bf16, ref, atol=5e-2, rtol=5e-2)

    # Full-precision path: tight tolerance check.
    params_f32 = prepare_params(w1, b1, w2, b2, use_bf16_inputs=False)
    out_f32 = jax.block_until_ready(
        rarity_predictor_forward(x, *params_f32))
    assert out_f32.shape == (batch, output_size)
    assert jnp.allclose(out_f32, ref, atol=1e-5, rtol=1e-5)

    print("KERNEL_OK")
</pallas_src>

<mosaic_0001>
module attributes {stable_mosaic.version = 11 : i64} {
  func.func @_mlp_kernel(%arg0: i32, %arg1: memref<16x32xbf16, #tpu.memory_space<vmem>>, %arg2: memref<32x128xbf16, #tpu.memory_space<vmem>>, %arg3: memref<1x128xf32, #tpu.memory_space<vmem>>, %arg4: memref<128x8xbf16, #tpu.memory_space<vmem>>, %arg5: memref<1x8xf32, #tpu.memory_space<vmem>>, %arg6: memref<16x8xf32, #tpu.memory_space<vmem>>) attributes {dimension_semantics = [#tpu.dimension_semantics<parallel>], iteration_bounds = array<i64: 1>, scalar_prefetch = 0 : i64, scratch_operands = 0 : i64, tpu.core_type = #tpu.core_type<tc>, window_params = [{transform_indices = @transform_0, window_bounds = array<i64: 16, 32>}, {pipeline_mode = #tpu.pipeline_mode<synchronous>, transform_indices = @transform_1, window_bounds = array<i64: 32, 128>}, {pipeline_mode = #tpu.pipeline_mode<synchronous>, transform_indices = @transform_2, window_bounds = array<i64: 1, 128>}, {pipeline_mode = #tpu.pipeline_mode<synchronous>, transform_indices = @transform_3, window_bounds = array<i64: 128, 8>}, {pipeline_mode = #tpu.pipeline_mode<synchronous>, transform_indices = @transform_4, window_bounds = array<i64: 1, 8>}, {transform_indices = @transform_5, window_bounds = array<i64: 16, 8>}]} {
    %c0 = arith.constant 0 : index
    %c0_0 = arith.constant 0 : index
    %0 = vector.load %arg1[%c0, %c0_0] : memref<16x32xbf16, #tpu.memory_space<vmem>>, vector<16x32xbf16>
    %c0_1 = arith.constant 0 : index
    %c0_2 = arith.constant 0 : index
    %1 = vector.load %arg2[%c0_1, %c0_2] : memref<32x128xbf16, #tpu.memory_space<vmem>>, vector<32x128xbf16>
    %cst = arith.constant dense<0.000000e+00> : vector<16x128xf32>
    %2 = tpu.matmul %0, %1, %cst {dimension_numbers = #tpu.dot_dimension_numbers<[1], [0], [0], [1], [0, 0, 1, 1], [], []>} : vector<16x32xbf16>, vector<32x128xbf16>, vector<16x128xf32> -> vector<16x128xf32>
    %c0_3 = arith.constant 0 : index
    %c0_4 = arith.constant 0 : index
    %3 = vector.load %arg3[%c0_3, %c0_4] : memref<1x128xf32, #tpu.memory_space<vmem>>, vector<1x128xf32>
    %4 = vector.broadcast %3 : vector<1x128xf32> to vector<16x128xf32>
    %5 = arith.addf %2, %4 : vector<16x128xf32>
    %cst_5 = arith.constant 0.000000e+00 : f32
    %6 = vector.broadcast %cst_5 : f32 to vector<16x128xf32>
    %7 = arith.maximumf %5, %6 : vector<16x128xf32>
    %8 = arith.truncf %7 : vector<16x128xf32> to vector<16x128xbf16>
    %c0_6 = arith.constant 0 : index
    %c0_7 = arith.constant 0 : index
    %9 = vector.load %arg4[%c0_6, %c0_7] : memref<128x8xbf16, #tpu.memory_space<vmem>>, vector<128x8xbf16>
    %cst_8 = arith.constant dense<0.000000e+00> : vector<16x8xf32>
    %10 = tpu.matmul %8, %9, %cst_8 {dimension_numbers = #tpu.dot_dimension_numbers<[1], [0], [0], [1], [0, 0, 1, 1], [], []>} : vector<16x128xbf16>, vector<128x8xbf16>, vector<16x8xf32> -> vector<16x8xf32>
    %c0_9 = arith.constant 0 : index
    %c0_10 = arith.constant 0 : index
    %11 = vector.load %arg5[%c0_9, %c0_10] : memref<1x8xf32, #tpu.memory_space<vmem>>, vector<1x8xf32>
    %12 = vector.broadcast %11 : vector<1x8xf32> to vector<16x8xf32>
    %13 = arith.addf %10, %12 : vector<16x8xf32>
    %c0_11 = arith.constant 0 : index
    %c0_12 = arith.constant 0 : index
    %14 = vector.load %arg6[%c0_11, %c0_12] : memref<16x8xf32, #tpu.memory_space<vmem>>, vector<16x8xf32>
    tpu.vector_store %arg6[%c0_11, %c0_12], %13 {strides = array<i32>} : memref<16x8xf32, #tpu.memory_space<vmem>>, vector<16x8xf32>,
    return
  }
  func.func @transform_0(%arg0: i32) -> (i32, i32) {
    %c0_i32 = arith.constant 0 : i32
    %c0_i32_0 = arith.constant 0 : i32
    return %arg0, %c0_i32 : i32, i32
  }
  func.func @transform_1(%arg0: i32) -> (i32, i32) {
    %c0_i32 = arith.constant 0 : i32
    %c0_i32_0 = arith.constant 0 : i32
    %c0_i32_1 = arith.constant 0 : i32
    return %c0_i32, %c0_i32_0 : i32, i32
  }
  func.func @transform_2(%arg0: i32) -> (i32, i32) {
    %c0_i32 = arith.constant 0 : i32
    %c0_i32_0 = arith.constant 0 : i32
    %c0_i32_1 = arith.constant 0 : i32
    return %c0_i32, %c0_i32_0 : i32, i32
  }
  func.func @transform_3(%arg0: i32) -> (i32, i32) {
    %c0_i32 = arith.constant 0 : i32
    %c0_i32_0 = arith.constant 0 : i32
    %c0_i32_1 = arith.constant 0 : i32
    return %c0_i32, %c0_i32_0 : i32, i32
  }
  func.func @transform_4(%arg0: i32) -> (i32, i32) {
    %c0_i32 = arith.constant 0 : i32
    %c0_i32_0 = arith.constant 0 : i32
    %c0_i32_1 = arith.constant 0 : i32
    return %c0_i32, %c0_i32_0 : i32, i32
  }
  func.func @transform_5(%arg0: i32) -> (i32, i32) {
    %c0_i32 = arith.constant 0 : i32
    %c0_i32_0 = arith.constant 0 : i32
    return %arg0, %c0_i32 : i32, i32
  }
}

</mosaic_0001>

<bundles_post_ra>
// kernel: tpu_custom_call.1
= control target key start
LH: loop header
LB: loop body
LE: loop exit
PB: predicated region body
PF: predicated region fallthrough
CT: control target
= control target key end

     0   :  { %v285_v0 = vmov 0.0   ;;  %vm286_vm0 = vmmov 0   ;;  %vm51_vm1 = vcmask 261120   ;;  %vm211_vm2 = vcmask 64512   ;;  %s362_s1 = inlined_call_operand.vmem [shape: bf16[32,128], index: 1, kind: input, shape index: {}]   ;;  %s363_s3 = inlined_call_operand.vmem [shape: bf16[128,8], index: 3, kind: input, shape index: {}]   ;;  %s364_s0 = inlined_call_operand.vmem [shape: bf16[16,32], index: 0, kind: input, shape index: {}]   ;;  %s365_s2 = inlined_call_operand.vmem [shape: f32[1,128], index: 2, kind: input, shape index: {}]   ;;  %s366_s4 = inlined_call_operand.vmem [shape: f32[1,8], index: 4, kind: input, shape index: {}]   ;;  %s367_s5 = inlined_call_operand.vmem [shape: f32[16,8], index: 5, kind: output, shape index: {}]  }
   0x1   :  { %244 = vmatprep.subr.bf16.mxu0 %v285_v0  ;;  %v274_v1 = vld [vmem:[%s362_s1 + $0x8] sm:$0xff]   ;;  %248 = vmatprep.mubr.msk.bf16.mxu0 %vm286_vm0, %v285_v0  ;;  %v275_v2 = vld [vmem:[%s362_s1] sm:$0xff]   ;;  %v277_v3 = vld [vmem:[%s363_s3 + $0x38] sm:$0xff]  }
   0x2   :  { %252 = vmatprep.subr.bf16.mxu1 %v285_v0  ;;  %268 = vmatprep.mubr.msk.bf16.mxu1 %vm286_vm0, %v285_v0  ;;  %v276_v4 = vld [vmem:[%s364_s0] sm:$0xff]   ;;  %v278_v5 = vld [vmem:[%s363_s3 + $0x30] sm:$0xff]   ;;  %v279_v6 = vld [vmem:[%s363_s3 + $0x28] sm:$0xff]  }
   0x3   :  { %245 = vmatpush3.bf16.msra.mxu0 %v274_v1  ;;  %253 = vmatpush3.bf16.msra.mxu1 %v277_v3  ;;  %v280_v7 = vld [vmem:[%s363_s3 + $0x20] sm:$0xff]   ;;  %v281_v8 = vld [vmem:[%s363_s3 + $0x18] sm:$0xff]   ;;  %v282_v9 = vld [vmem:[%s363_s3 + $0x10] sm:$0xff]  }
   0x4   :  { %246 = vmatprep.subr.bf16.mxu0 %v285_v0  ;;  %254 = vmatprep.subr.bf16.mxu1 %v285_v0  ;;  %v283_v10 = vld [vmem:[%s363_s3 + $0x8] sm:$0xff]   ;;  %v284_v11 = vld [vmem:[%s363_s3] sm:$0xff]  }
   0x5   :  { %v218_v12 = vld [vmem:[%s365_s2] ss:$0 sm:$0xff] }
   0x6   :  { %v223_v22 = vld [vmem:[%s366_s4] ss:$0 sm:$0xff] }
   0x7   :  { %247 = vmatpush3.bf16.msra.mxu0 %v275_v2  ;;  %255 = vmatpush3.bf16.msra.mxu1 %v278_v5 }
   0x8   :  { %256 = vmatprep.subr.bf16.mxu1 %v285_v0 }
   0xa   :  { %249 = vmatmul.mubr.msk.bf16.vlgmr.msra.gmra.mxu0 %vm51_vm1, %v276_v4 }
   0xb   :  { %257 = vmatpush3.bf16.msra.mxu1 %v279_v6 }
   0xc   :  { %258 = vmatprep.subr.bf16.mxu1 %v285_v0 }
   0xf   :  { %259 = vmatpush3.bf16.msra.mxu1 %v280_v7 }
  0x10   :  { %260 = vmatprep.subr.bf16.mxu1 %v285_v0 }
  0x13   :  { %261 = vmatpush3.bf16.msra.mxu1 %v281_v8 }
  0x14   :  { %262 = vmatprep.subr.bf16.mxu1 %v285_v0 }
  0x17   :  { %263 = vmatpush3.bf16.msra.mxu1 %v282_v9 }
  0x18   :  { %264 = vmatprep.subr.bf16.mxu1 %v285_v0 }
  0x1b   :  { %265 = vmatpush3.bf16.msra.mxu1 %v283_v10 }
  0x1c   :  { %266 = vmatprep.subr.bf16.mxu1 %v285_v0 }
  0x1f   :  { %267 = vmatpush3.bf16.msra.mxu1 %v284_v11 }
  0xca   :  { %v89_v13 = vpop.f32.mrf.mxu0 }
  0xcb   :  { %v90_v15 = vadd.f32 %v218_v12, %v89_v13 }
  0xcc   :  { %v250_v14 = vpop.f32.mrf.mxu0 }
  0xcd   :  { %v96_v19 = vmax.f32 %v90_v15, 0.0 }
  0xce   :  { %v92_v16 = vpop.f32.mrf.mxu0 }
  0xcf   :  { %v93_v17 = vadd.f32 %v218_v12, %v92_v16 }
  0xd0   :  { %v251_v18 = vpop.f32.mrf.mxu0 }
  0xd1   :  { %v97_v20 = vmax.f32 %v93_v17, 0.0 }
  0xd3   :  { %v98_v21 = vpack.c.bf16 %v97_v20, %v96_v19 }
  0xd5   :  { %269 = vmatmul.mubr.bf16.vlgmr.msra.gmra.mxu1 %v98_v21 }
 0x195   :  { %v204_v23 = vpop.f32.mrf.mxu1 }
 0x196   :  { %v205_v24 = vadd.f32 %v223_v22, %v204_v23 }
 0x197   :  { %v270_v25 = vpop.f32.mrf.mxu1 }
 0x198   :  { %212 = vst.msk [vmem:[%s367_s5] sm:$0xff] %vm211_vm2, %v205_v24 }
 0x199   :  { %v207_v26 = vpop.f32.mrf.mxu1 }
 0x19a   :  { %v208_v27 = vadd.f32 %v223_v22, %v207_v26 }
 0x19b   :  { %v271_v28 = vpop.f32.mrf.mxu1 }
 0x19c   :  { %213 = vst.msk [vmem:[%s367_s5 + $0x8] sm:$0xff] %vm211_vm2, %v208_v27 }

</bundles_post_ra>
